<compile_context>
chip_gen: v5e
topology: v5e:2x2
jax: 0.10.0
libtpu: 0.0.40
codegen_flags: <defaults>
</compile_context>

<pallas_src>
import functools

import jax
import jax.numpy as jnp
from jax.experimental import pallas as pl
from jax.experimental.pallas import tpu as pltpu


_NO_PARAM = ("relu", "abs", "tanh", "powfixed")
_BIAS_ONLY = ("absdead", "thresh")
_GAIN_BIAS = ("sigmoid", "pow")
_ALL = _NO_PARAM + _BIAS_ONLY + _GAIN_BIAS


def _round_up(n, m):
    return ((n + m - 1) // m) * m


# ----------------------------- kernels ------------------------------------


def _kernel_no_param(name):
    """Variants that need neither gain nor bias: only x is DMA'd."""

    def kernel(x_ref, o_ref):
        x = x_ref[...]
        zero = jnp.zeros((), x.dtype)
        if name == "relu":
            o = jnp.maximum(x, zero)
        elif name == "abs":
            o = jnp.abs(x)
        elif name == "tanh":
            o = jnp.tanh(x)
        else:  # powfixed
            o = x / (1.0 + jnp.abs(x))
        o_ref[...] = o.astype(o_ref.dtype)

    return kernel


def _kernel_bias(name):
    """Variants that need only the per-row bias."""

    def kernel(x_ref, bias_ref, o_ref):
        x = x_ref[...]
        b = bias_ref[...]            # (TR, 1) -> broadcast across lanes
        zero = jnp.zeros((), x.dtype)
        if name == "absdead":
            o = jnp.maximum(x - b, zero) + jnp.maximum(-x - b, zero)
        else:  # thresh
            o = jnp.maximum(x - b, zero) - jnp.maximum(-x - b, zero)
        o_ref[...] = o.astype(o_ref.dtype)

    return kernel


def _kernel_gain_bias(name):
    """Variants that need both gain and bias (sigmoid / pow)."""

    def kernel(x_ref, gain_ref, bias_ref, o_ref):
        x = x_ref[...]
        g = gain_ref[...]            # (TR, 1)
        b = bias_ref[...]            # (TR, 1)
        ax = jnp.abs(x)
        if name == "sigmoid":
            s = jax.nn.sigmoid(g * ax + b)
            o = s * pl.reciprocal(ax + 1e-6, approx=True) * x
        else:  # pow; g/b already hold exp(gain)/exp(bias) (hoisted in wrapper)
            t = b * ax ** g
            o = t * pl.reciprocal((1.0 + t) * (ax + 1e-6), approx=True) * x
        o_ref[...] = o.astype(o_ref.dtype)

    return kernel


# ----------------------------- wrapper -------------------------------------


def _row_vector(per_channel, B, rows_p, dtype, pad_value):
    """(C,) per-channel vector -> padded (rows_p, 1) per-(b*C + c)-row vector."""
    vec = jnp.tile(per_channel.astype(dtype), (B,))      # row b*C + c -> chan c
    vec = jnp.pad(vec, (0, rows_p - vec.shape[0]), constant_values=pad_value)
    return vec.reshape(rows_p, 1)


@functools.partial(jax.jit, static_argnames=("non_linearity",))
def nonlin_forward(x, gain, bias, *, non_linearity):
    """Pallas implementation of NonLin.forward for NCHW input."""
    if non_linearity not in _ALL:
        raise ValueError(f"unknown non_linearity {non_linearity!r}")

    B, C, H, W = x.shape
    rows, pixels = B * C, H * W
    dtype = x.dtype

    # Sublane packing multiple by element width (f32 -> 8, bf16 -> 16, i8 -> 32).
    sub = {4: 8, 2: 16, 1: 32}.get(jnp.dtype(dtype).itemsize, 8)

    # Large, lane-dense blocks, capped at the (padded) array extent.
    TL = min(_round_up(pixels, 128), 1024)    # lanes
    TR = min(_round_up(rows, sub), 256)       # sublanes
    rows_p = _round_up(rows, TR)
    pix_p = _round_up(pixels, TL)

    x2 = x.reshape(rows, pixels)
    if (rows_p, pix_p) != (rows, pixels):
        x2 = jnp.pad(x2, ((0, rows_p - rows), (0, pix_p - pixels)))

    grid = (rows_p // TR, pix_p // TL)
    x_spec = pl.BlockSpec((TR, TL), lambda i, j: (i, j))
    o_spec = pl.BlockSpec((TR, TL), lambda i, j: (i, j))
    vec_spec = pl.BlockSpec((TR, 1), lambda i, j: (i, 0))

    if non_linearity in _NO_PARAM:
        kernel = _kernel_no_param(non_linearity)
        in_specs = [x_spec]
        operands = (x2,)
    elif non_linearity in _BIAS_ONLY:
        kernel = _kernel_bias(non_linearity)
        in_specs = [x_spec, vec_spec]
        operands = (x2, _row_vector(bias, B, rows_p, dtype, 0.0))
    else:  # sigmoid / pow
        kernel = _kernel_gain_bias(non_linearity)
        if non_linearity == "pow":
            # Hoist per-channel exponentials out of the per-tile kernel body.
            g_vec = _row_vector(jnp.exp(gain), B, rows_p, dtype, 1.0)
            b_vec = _row_vector(jnp.exp(bias), B, rows_p, dtype, 1.0)
        else:
            g_vec = _row_vector(gain, B, rows_p, dtype, 1.0)
            b_vec = _row_vector(bias, B, rows_p, dtype, 0.0)
        in_specs = [x_spec, vec_spec, vec_spec]
        operands = (x2, g_vec, b_vec)

    out2 = pl.pallas_call(
        kernel,
        out_shape=jax.ShapeDtypeStruct((rows_p, pix_p), dtype),
        grid=grid,
        in_specs=in_specs,
        out_specs=o_spec,
        compiler_params=pltpu.CompilerParams(
            dimension_semantics=("parallel", "parallel")),
    )(*operands)

    return out2[:rows, :pixels].reshape(B, C, H, W)


# ----------------------------- reference -----------------------------------


def nonlin_reference(x, gain, bias, non_linearity):
    """Pure-JAX reference mirroring the PyTorch forward (NCHW)."""
    g = gain[None, :, None, None]
    b = bias[None, :, None, None]
    if non_linearity == "relu":
        return jnp.maximum(x, 0.0)
    if non_linearity == "abs":
        return jnp.abs(x)
    if non_linearity == "absdead":
        return jnp.maximum(x - b, 0.0) + jnp.maximum(-x - b, 0.0)
    if non_linearity == "thresh":
        return jnp.maximum(x - b, 0.0) - jnp.maximum(-x - b, 0.0)
    if non_linearity == "tanh":
        return jnp.tanh(x)
    if non_linearity == "sigmoid":
        ax = jnp.abs(x)
        return jax.nn.sigmoid(g * ax + b) / (ax + 1e-6) * x
    if non_linearity == "pow":
        ax = jnp.abs(x)
        t = jnp.exp(b) * ax ** jnp.exp(g)
        return t / ((1.0 + t) * (ax + 1e-6)) * x
    if non_linearity == "powfixed":
        return x / (1.0 + jnp.abs(x))
    raise ValueError(non_linearity)


if __name__ == "__main__":
    names = list(_ALL)
    # Tight tolerance for exact branches; sigmoid/pow intentionally use
    # pl.reciprocal(approx=True), so they are compared more loosely.
    tol = {n: (1e-5, 1e-5) for n in names}
    tol["sigmoid"] = (2e-2, 2e-2)
    tol["pow"] = (2e-2, 2e-2)

    key = jax.random.PRNGKey(0)
    # Second shape exercises the padding path (rows/pixels not (8,128)-aligned).
    for (B, C, H, W) in [(2, 4, 16, 16), (2, 3, 7, 7)]:
        key, kx = jax.random.split(key)
        x = jax.random.normal(kx, (B, C, H, W), dtype=jnp.float32)

        # Deterministic parameter init, same as nn.Parameter(torch.full((C,), v)).
        init_gain, init_bias = 1.5, 0.1
        gain = jnp.full((C,), init_gain, dtype=jnp.float32)
        bias = jnp.full((C,), init_bias, dtype=jnp.float32)

        for name in names:
            out = nonlin_forward(x, gain, bias, non_linearity=name)
            out = jax.block_until_ready(out)
            ref = nonlin_reference(x, gain, bias, name)
            assert out.shape == x.shape and out.dtype == x.dtype, name
            atol, rtol = tol[name]
            assert jnp.allclose(out, ref, atol=atol, rtol=rtol), (name, (B, C, H, W))

    print("KERNEL_OK")
</pallas_src>

<mosaic_0001>
module attributes {stable_mosaic.version = 11 : i64} {
  func.func @kernel(%arg0: i32, %arg1: i32, %arg2: memref<8x256xf32, #tpu.memory_space<vmem>>, %arg3: memref<8x256xf32, #tpu.memory_space<vmem>>) attributes {dimension_semantics = [#tpu.dimension_semantics<parallel>, #tpu.dimension_semantics<parallel>], iteration_bounds = array<i64: 1, 1>, scalar_prefetch = 0 : i64, scratch_operands = 0 : i64, tpu.core_type = #tpu.core_type<tc>, window_params = [{transform_indices = @transform_0, window_bounds = array<i64: 8, 256>}, {transform_indices = @transform_1, window_bounds = array<i64: 8, 256>}]} {
    %c0 = arith.constant 0 : index
    %c0_0 = arith.constant 0 : index
    %0 = vector.load %arg2[%c0, %c0_0] : memref<8x256xf32, #tpu.memory_space<vmem>>, vector<8x256xf32>
    %cst = arith.constant 0.000000e+00 : f32
    %1 = vector.broadcast %cst : f32 to vector<8x256xf32>
    %2 = arith.maximumf %0, %1 : vector<8x256xf32>
    %c0_1 = arith.constant 0 : index
    %c0_2 = arith.constant 0 : index
    %3 = vector.load %arg3[%c0_1, %c0_2] : memref<8x256xf32, #tpu.memory_space<vmem>>, vector<8x256xf32>
    tpu.vector_store %arg3[%c0_1, %c0_2], %2 {strides = array<i32>} : memref<8x256xf32, #tpu.memory_space<vmem>>, vector<8x256xf32>,
    return
  }
  func.func @transform_0(%arg0: i32, %arg1: i32) -> (i32, i32) {
    %c0_i32 = arith.constant 0 : i32
    return %arg0, %arg1 : i32, i32
  }
  func.func @transform_1(%arg0: i32, %arg1: i32) -> (i32, i32) {
    %c0_i32 = arith.constant 0 : i32
    return %arg0, %arg1 : i32, i32
  }
}

</mosaic_0001>

<bundles_post_ra>
// kernel: nonlin_forward.1
= control target key start
LH: loop header
LB: loop body
LE: loop exit
PB: predicated region body
PF: predicated region fallthrough
CT: control target
= control target key end

     0   :  { %s40_s0 = inlined_call_operand.vmem [shape: f32[8,256], index: 0, kind: input, shape index: {}]   ;;  %s41_s1 = inlined_call_operand.vmem [shape: f32[8,256], index: 1, kind: output, shape index: {}]  }
   0x1   :  { %v8_v0 = vld [vmem:[%s40_s0] sm:$0xff]  ;;  %v9_v1 = vld [vmem:[%s40_s0 + $0x8] sm:$0xff] }
   0x2   :  { %v10_v2 = vmax.f32 %v8_v0, 0.0  ;;  %v11_v3 = vmax.f32 %v9_v1, 0.0 }
   0x4   :  { %12 = vst [vmem:[%s41_s1] sm:$0xff] %v10_v2 }
   0x5   :  { %13 = vst [vmem:[%s41_s1 + $0x8] sm:$0xff] %v11_v3 }

</bundles_post_ra>
